<compile_context>
chip_gen: v7x
topology: tpu7x:2x2x1
jax: 0.10.0
libtpu: 0.0.40
codegen_flags: <defaults>
</compile_context>

<pallas_src>
import jax
import jax.numpy as jnp
from jax import lax
from jax.experimental import pallas as pl
from jax.experimental.pallas import tpu as pltpu

_STATS_MAX_LANE_TILE = 2048  # stats kernel unrolls tl//128 chunk-adds; init-only, keep modest


def _round_up(a, b):
    return ((a + b - 1) // b) * b


def _sublane_mult(dtype):
    return {1: 32, 2: 16, 4: 8}.get(jnp.dtype(dtype).itemsize, 8)


def _chip_budgets():
    """(per-x-block byte budget, scoped vmem_limit_bytes), per TPU generation."""
    vmem_cap = None
    try:
        info = pltpu.get_tpu_info()
        vmem_cap = getattr(info, "vmem_capacity_bytes", None)
    except Exception:
        vmem_cap = None
    if vmem_cap is None:
        vmem_cap = 64 << 20                       # conservative: assume v7x-class 64 MiB/TC
    if vmem_cap <= (64 << 20):                    # v7x: 64 MiB per TensorCore
        return 4 << 20, 48 << 20
    return 8 << 20, 64 << 20                      # v5e / v6e: 128 MiB physical VMEM


def _pick_tiles(nrows, ncols, itemsize, block_budget, sublane_mult, max_lanes=None):
    """Jointly size (row_tile, lane_tile) so the x block sits near the byte budget."""
    # Lane (last-dim) tile: multiple of 128 unless the whole extent is < 128.
    if ncols < 128:
        tl = ncols
    else:
        cap = max(128, (block_budget // (sublane_mult * itemsize)) // 128 * 128)
        tl = min((ncols // 128) * 128, cap)
        if max_lanes is not None:
            tl = min(tl, max_lanes)
    # Row (second-to-last) tile: multiple of the dtype's native sublane tile, grown toward the
    # byte budget; cap so the "parallel" row axis keeps >= 2 blocks (v7x megacore) when possible.
    if nrows <= sublane_mult:
        tr = nrows
    else:
        tr_budget = max(sublane_mult,
                        (block_budget // (tl * itemsize)) // sublane_mult * sublane_mult)
        half = _round_up(pl.cdiv(nrows, 2), sublane_mult)
        tr = min(tr_budget, half, _round_up(nrows, sublane_mult))
    return tr, tl


# --------------------------------------------------------------------------------- kernels


def _make_stats_kernel(tr, tl, ncols):
    """Per-row sum(x - c) and sum((x - c)^2) with a deferred cross-lane reduce."""
    fold = (tl % 128 == 0)
    needs_mask = (ncols % tl) != 0

    def kernel(x_ref, c_ref, sum_ref, csq_ref, acc_s, acc_q):
        m = pl.program_id(1)

        @pl.when(m == 0)
        def _():
            acc_s[...] = jnp.zeros_like(acc_s)
            acc_q[...] = jnp.zeros_like(acc_q)

        c = c_ref[...]                                     # (TR, 1) f32 center (0 or mean)

        if fold:
            # Hot loop is vld + vsub + vadd into a lane-wide (TR, 128) accumulator; the single
            # XLU cross-lane reduce happens only once, on the last lane tile.
            for j in range(tl // 128):
                xs = x_ref[:, j * 128:(j + 1) * 128].astype(jnp.float32)
                d = xs - c
                if needs_mask:
                    lane = (m * tl + j * 128
                            + lax.broadcasted_iota(jnp.int32, (tr, 128), 1))
                    d = jnp.where(lane < ncols, d, 0.0)
                acc_s[...] += d
                acc_q[...] += d * d
        else:
            # ncols < 128: single lane tile, direct reduce (no fold possible / needed).
            d = x_ref[...].astype(jnp.float32) - c
            acc_s[...] += jnp.sum(d, axis=1, keepdims=True)
            acc_q[...] += jnp.sum(d * d, axis=1, keepdims=True)

        @pl.when(m == pl.num_programs(1) - 1)
        def _():
            sum_ref[...] = jnp.sum(acc_s[...], axis=1, keepdims=True)
            csq_ref[...] = jnp.sum(acc_q[...], axis=1, keepdims=True)

    return kernel, (128 if fold else 1)


def _affine_rows_kernel(x_ref, ss_ref, y_ref):
    """y = x * scale + shift, per-row scale/shift packed as ss[:, 0]=scale, ss[:, 1]=shift.

    FMA is done in f32 (matches the f32 reference; free for this HBM-bound kernel, and avoids
    bf16 double-rounding / v5e's lack of bf16 VALUs); cast happens only at the store.
    """
    x = x_ref[...].astype(jnp.float32)
    y = x * ss_ref[:, 0:1] + ss_ref[:, 1:2]
    y_ref[...] = y.astype(y_ref.dtype)


def _affine_cols_kernel(x_ref, ss_ref, y_ref):
    """Lane-dense variant: per-column scale/shift (ss[0, :]=scale, ss[1, :]=shift)."""
    x = x_ref[...].astype(jnp.float32)
    y = x * ss_ref[0:1, :] + ss_ref[1:2, :]
    y_ref[...] = y.astype(y_ref.dtype)


# -------------------------------------------------------------------------- pallas_call wrappers


def _row_stats(x2, center_rows, tr, tl, vmem_limit):
    nr, ncols = x2.shape
    kernel, acc_lanes = _make_stats_kernel(tr, tl, ncols)
    grid = (pl.cdiv(nr, tr), pl.cdiv(ncols, tl))
    return pl.pallas_call(
        kernel,
        grid=grid,
        in_specs=[
            pl.BlockSpec((tr, tl), lambda i, m: (i, m)),
            pl.BlockSpec((tr, 1), lambda i, m: (i, 0)),
        ],
        out_specs=[
            pl.BlockSpec((tr, 1), lambda i, m: (i, 0)),
            pl.BlockSpec((tr, 1), lambda i, m: (i, 0)),
        ],
        out_shape=[
            jax.ShapeDtypeStruct((nr, 1), jnp.float32),
            jax.ShapeDtypeStruct((nr, 1), jnp.float32),
        ],
        scratch_shapes=[
            pltpu.VMEM((tr, acc_lanes), jnp.float32),
            pltpu.VMEM((tr, acc_lanes), jnp.float32),
        ],
        compiler_params=pltpu.CompilerParams(
            dimension_semantics=("parallel", "arbitrary"),
            vmem_limit_bytes=vmem_limit,
        ),
    )(x2, center_rows)


def _apply_affine_rows(x2, ss_rows, tr, tl, vmem_limit):
    nr, ncols = x2.shape
    grid = (pl.cdiv(nr, tr), pl.cdiv(ncols, tl))
    return pl.pallas_call(
        _affine_rows_kernel,
        grid=grid,
        in_specs=[
            pl.BlockSpec((tr, tl), lambda i, m: (i, m)),
            pl.BlockSpec((tr, 2), lambda i, m: (i, 0)),
        ],
        out_specs=pl.BlockSpec((tr, tl), lambda i, m: (i, m)),
        out_shape=jax.ShapeDtypeStruct((nr, ncols), x2.dtype),
        compiler_params=pltpu.CompilerParams(
            dimension_semantics=("parallel", "parallel"),
            vmem_limit_bytes=vmem_limit,
        ),
    )(x2, ss_rows)


def _apply_affine_cols(x2, ss_cols, tr, tl, vmem_limit):
    nrows, ncols = x2.shape
    grid = (pl.cdiv(nrows, tr), pl.cdiv(ncols, tl))
    return pl.pallas_call(
        _affine_cols_kernel,
        grid=grid,
        in_specs=[
            pl.BlockSpec((tr, tl), lambda i, m: (i, m)),
            pl.BlockSpec((2, tl), lambda i, m: (0, m)),
        ],
        out_specs=pl.BlockSpec((tr, tl), lambda i, m: (i, m)),
        out_shape=jax.ShapeDtypeStruct((nrows, ncols), x2.dtype),
        compiler_params=pltpu.CompilerParams(
            dimension_semantics=("parallel", "parallel"),
            vmem_limit_bytes=vmem_limit,
        ),
    )(x2, ss_cols)


# --------------------------------------------------------------------------------- public forward


def actnorm2d_forward(x, log_scale=None, shift=None, *, init=False, eps=1e-5):
    """ActNorm2D.forward.

    x: (N, C, H, W).  If init=True, replicates the PyTorch data-dependent initialization
    (first forward call) and returns (y, logdet, log_scale, shift).  Otherwise uses the
    provided per-channel parameters and returns (y, logdet).
    """
    N, C, H, W = x.shape
    hw = H * W
    nr = N * C
    itemsize = jnp.dtype(x.dtype).itemsize
    block_budget, vmem_limit = _chip_budgets()
    sub = _sublane_mult(x.dtype)

    x_rows = x.reshape(nr, hw)                    # free: NCHW is contiguous in this order

    if init:
        # Two-pass, per-row accumulated stats (matches the PyTorch centered-variance init,
        # immune to E[x^2]-mean^2 cancellation).  Init is rare, so an extra pass is fine.
        tr_s, tl_s = _pick_tiles(nr, hw, itemsize, block_budget, sub,
                                 max_lanes=_STATS_MAX_LANE_TILE)
        zeros_c = jnp.zeros((nr, 1), jnp.float32)
        row_sum, _ = _row_stats(x_rows, zeros_c, tr_s, tl_s, vmem_limit)
        count = jnp.float32(N * hw)
        mean = jnp.sum(row_sum.reshape(N, C), axis=0) / count

        mean_rows = jnp.broadcast_to(mean[None, :], (N, C)).reshape(nr, 1)
        _, row_csq = _row_stats(x_rows, mean_rows, tr_s, tl_s, vmem_limit)
        var = jnp.sum(row_csq.reshape(N, C), axis=0) / count

        log_scale = -0.5 * jnp.log(var + eps)     # log(1 / std)
        shift = -mean * jnp.exp(log_scale)
    else:
        log_scale = log_scale.reshape(C).astype(jnp.float32)
        shift = shift.reshape(C).astype(jnp.float32)

    # scale / logdet are C scalars: precompute in plain JAX so the hot kernel is a pure FMA.
    scale = jnp.exp(log_scale)
    logdet = jnp.sum(log_scale) * hw

    # Lane-dense layout for small / awkward feature maps: avoids masked partial stores.
    use_cols = (hw < 128) or (hw % 128 != 0 and (C * hw) % 128 == 0)
    if use_cols:
        x_cols = x.reshape(N, C * hw)
        ss_cols = jnp.stack([jnp.repeat(scale, hw), jnp.repeat(shift, hw)],
                            axis=0).astype(jnp.float32)                 # (2, C*hw)
        tr, tl = _pick_tiles(N, C * hw, itemsize, block_budget, sub)
        y = _apply_affine_cols(x_cols, ss_cols, tr, tl, vmem_limit).reshape(N, C, H, W)
    else:
        scale_rows = jnp.broadcast_to(scale[None, :], (N, C)).reshape(nr)
        shift_rows = jnp.broadcast_to(shift[None, :], (N, C)).reshape(nr)
        ss_rows = jnp.stack([scale_rows, shift_rows], axis=1).astype(jnp.float32)  # (nr, 2)
        tr, tl = _pick_tiles(nr, hw, itemsize, block_budget, sub)
        y = _apply_affine_rows(x_rows, ss_rows, tr, tl, vmem_limit).reshape(N, C, H, W)

    if init:
        return y, logdet, log_scale, shift
    return y, logdet


# --------------------------------------------------------------------------------- reference + test


def _reference_forward(x, eps=1e-5):
    """Plain-JAX reference mirroring the PyTorch first-call forward."""
    N, C, H, W = x.shape
    xf = x.astype(jnp.float32)
    xc = jnp.transpose(xf, (1, 0, 2, 3)).reshape(C, -1)
    mean = jnp.mean(xc, axis=1)
    var = jnp.mean((xc - mean[:, None]) ** 2, axis=1)
    std = jnp.sqrt(var + eps)
    log_scale = jnp.log(1.0 / std)
    shift = -mean * jnp.exp(log_scale)
    y = xf * jnp.exp(log_scale)[None, :, None, None] + shift[None, :, None, None]
    logdet = jnp.sum(log_scale) * H * W
    return y.astype(x.dtype), logdet, log_scale, shift


def _check(x):
    # TODO(synk): the PyTorch module's stateful `_init` flag / Parameter mutation has no
    # in-kernel equivalent; it is modeled as the `init=` flag plus returned parameters.
    y, logdet, log_scale, shift = actnorm2d_forward(x, init=True)
    jax.block_until_ready((y, logdet, log_scale, shift))

    y_r, logdet_r, ls_r, sh_r = _reference_forward(x)
    assert jnp.allclose(y, y_r, atol=1e-4, rtol=1e-4), "y mismatch"
    assert jnp.allclose(logdet, logdet_r, atol=1e-3, rtol=1e-4), "logdet mismatch"
    assert jnp.allclose(log_scale, ls_r, atol=1e-5, rtol=1e-5), "log_scale mismatch"
    assert jnp.allclose(shift, sh_r, atol=1e-5, rtol=1e-5), "shift mismatch"

    y2, logdet2 = actnorm2d_forward(x, log_scale, shift, init=False)
    jax.block_until_ready((y2, logdet2))
    assert jnp.allclose(y2, y_r, atol=1e-4, rtol=1e-4), "affine y mismatch"
    assert jnp.allclose(logdet2, logdet_r, atol=1e-3, rtol=1e-4), "affine logdet mismatch"


if __name__ == "__main__":
    key = jax.random.PRNGKey(0)
    k1, k2, k3 = jax.random.split(key, 3)

    # Primary shape implied by the module (batch=2, channels=4, spatial 16x16).
    _check(jax.random.normal(k1, (2, 4, 16, 16), jnp.float32) * 1.7 + 0.3)
    # Small feature map (hw < 128): exercises the lane-dense (N, C*H*W) affine layout.
    _check(jax.random.normal(k2, (2, 4, 8, 8), jnp.float32) * 0.9 - 1.2)
    # Spatial extent not a multiple of 128: exercises cdiv grids with masked edge tiles.
    _check(jax.random.normal(k3, (2, 4, 12, 11), jnp.float32) * 2.3 + 0.5)

    print("KERNEL_OK")
</pallas_src>

<mosaic_0001>
module attributes {stable_mosaic.version = 11 : i64} {
  func.func @kernel(%arg0: i32, %arg1: i32, %arg2: memref<8x256xf32, #tpu.memory_space<vmem>>, %arg3: memref<8x1xf32, #tpu.memory_space<vmem>>, %arg4: memref<8x1xf32, #tpu.memory_space<vmem>>, %arg5: memref<8x1xf32, #tpu.memory_space<vmem>>, %arg6: memref<8x128xf32, #tpu.memory_space<vmem>>, %arg7: memref<8x128xf32, #tpu.memory_space<vmem>>) attributes {dimension_semantics = [#tpu.dimension_semantics<parallel>, #tpu.dimension_semantics<arbitrary>], iteration_bounds = array<i64: 1, 1>, scalar_prefetch = 0 : i64, scratch_operands = 2 : i64, tpu.core_type = #tpu.core_type<tc>, window_params = [{transform_indices = @transform_0, window_bounds = array<i64: 8, 256>}, {transform_indices = @transform_1, window_bounds = array<i64: 8, 1>}, {transform_indices = @transform_2, window_bounds = array<i64: 8, 1>}, {transform_indices = @transform_3, window_bounds = array<i64: 8, 1>}]} {
    %c0_i32 = arith.constant 0 : i32
    %0 = arith.cmpi eq, %arg1, %c0_i32 : i32
    %1 = arith.extui %0 : i1 to i32
    %c0_i32_0 = arith.constant 0 : i32
    %2 = arith.cmpi ne, %1, %c0_i32_0 : i32
    scf.if %2 {
      %cst = arith.constant 0.000000e+00 : f32
      %27 = vector.broadcast %cst : f32 to vector<8x128xf32>
      %c0_23 = arith.constant 0 : index
      %c0_24 = arith.constant 0 : index
      %28 = vector.load %arg6[%c0_23, %c0_24] : memref<8x128xf32, #tpu.memory_space<vmem>>, vector<8x128xf32>
      tpu.vector_store %arg6[%c0_23, %c0_24], %27 {strides = array<i32>} : memref<8x128xf32, #tpu.memory_space<vmem>>, vector<8x128xf32>,
      %cst_25 = arith.constant 0.000000e+00 : f32
      %29 = vector.broadcast %cst_25 : f32 to vector<8x128xf32>
      %c0_26 = arith.constant 0 : index
      %c0_27 = arith.constant 0 : index
      %30 = vector.load %arg7[%c0_26, %c0_27] : memref<8x128xf32, #tpu.memory_space<vmem>>, vector<8x128xf32>
      tpu.vector_store %arg7[%c0_26, %c0_27], %29 {strides = array<i32>} : memref<8x128xf32, #tpu.memory_space<vmem>>, vector<8x128xf32>,
    } else {
    }
    %c0 = arith.constant 0 : index
    %c0_1 = arith.constant 0 : index
    %3 = vector.load %arg3[%c0, %c0_1] : memref<8x1xf32, #tpu.memory_space<vmem>>, vector<8x1xf32>
    %c0_2 = arith.constant 0 : index
    %c0_3 = arith.constant 0 : index
    %4 = vector.load %arg2[%c0_2, %c0_3] : memref<8x256xf32, #tpu.memory_space<vmem>>, vector<8x128xf32>
    %5 = vector.broadcast %3 : vector<8x1xf32> to vector<8x128xf32>
    %6 = arith.subf %4, %5 : vector<8x128xf32>
    %c0_4 = arith.constant 0 : index
    %c0_5 = arith.constant 0 : index
    %7 = vector.load %arg6[%c0_4, %c0_5] : memref<8x128xf32, #tpu.memory_space<vmem>>, vector<8x128xf32>
    %8 = arith.addf %7, %6 : vector<8x128xf32>
    %c0_6 = arith.constant 0 : index
    %c0_7 = arith.constant 0 : index
    %9 = vector.load %arg6[%c0_6, %c0_7] : memref<8x128xf32, #tpu.memory_space<vmem>>, vector<8x128xf32>
    tpu.vector_store %arg6[%c0_6, %c0_7], %8 {strides = array<i32>} : memref<8x128xf32, #tpu.memory_space<vmem>>, vector<8x128xf32>,
    %c0_8 = arith.constant 0 : index
    %c0_9 = arith.constant 0 : index
    %10 = vector.load %arg7[%c0_8, %c0_9] : memref<8x128xf32, #tpu.memory_space<vmem>>, vector<8x128xf32>
    %11 = arith.mulf %6, %6 : vector<8x128xf32>
    %12 = arith.addf %10, %11 : vector<8x128xf32>
    %c0_10 = arith.constant 0 : index
    %c0_11 = arith.constant 0 : index
    %13 = vector.load %arg7[%c0_10, %c0_11] : memref<8x128xf32, #tpu.memory_space<vmem>>, vector<8x128xf32>
    tpu.vector_store %arg7[%c0_10, %c0_11], %12 {strides = array<i32>} : memref<8x128xf32, #tpu.memory_space<vmem>>, vector<8x128xf32>,
    %c0_12 = arith.constant 0 : index
    %c128 = arith.constant 128 : index
    %14 = vector.load %arg2[%c0_12, %c128] : memref<8x256xf32, #tpu.memory_space<vmem>>, vector<8x128xf32>
    %15 = vector.broadcast %3 : vector<8x1xf32> to vector<8x128xf32>
    %16 = arith.subf %14, %15 : vector<8x128xf32>
    %c0_13 = arith.constant 0 : index
    %c0_14 = arith.constant 0 : index
    %17 = vector.load %arg6[%c0_13, %c0_14] : memref<8x128xf32, #tpu.memory_space<vmem>>, vector<8x128xf32>
    %18 = arith.addf %17, %16 : vector<8x128xf32>
    %c0_15 = arith.constant 0 : index
    %c0_16 = arith.constant 0 : index
    %19 = vector.load %arg6[%c0_15, %c0_16] : memref<8x128xf32, #tpu.memory_space<vmem>>, vector<8x128xf32>
    tpu.vector_store %arg6[%c0_15, %c0_16], %18 {strides = array<i32>} : memref<8x128xf32, #tpu.memory_space<vmem>>, vector<8x128xf32>,
    %c0_17 = arith.constant 0 : index
    %c0_18 = arith.constant 0 : index
    %20 = vector.load %arg7[%c0_17, %c0_18] : memref<8x128xf32, #tpu.memory_space<vmem>>, vector<8x128xf32>
    %21 = arith.mulf %16, %16 : vector<8x128xf32>
    %22 = arith.addf %20, %21 : vector<8x128xf32>
    %c0_19 = arith.constant 0 : index
    %c0_20 = arith.constant 0 : index
    %23 = vector.load %arg7[%c0_19, %c0_20] : memref<8x128xf32, #tpu.memory_space<vmem>>, vector<8x128xf32>
    tpu.vector_store %arg7[%c0_19, %c0_20], %22 {strides = array<i32>} : memref<8x128xf32, #tpu.memory_space<vmem>>, vector<8x128xf32>,
    %c0_i32_21 = arith.constant 0 : i32
    %24 = arith.cmpi eq, %arg1, %c0_i32_21 : i32
    %25 = arith.extui %24 : i1 to i32
    %c0_i32_22 = arith.constant 0 : i32
    %26 = arith.cmpi ne, %25, %c0_i32_22 : i32
    scf.if %26 {
      %c0_23 = arith.constant 0 : index
      %c0_24 = arith.constant 0 : index
      %27 = vector.load %arg6[%c0_23, %c0_24] : memref<8x128xf32, #tpu.memory_space<vmem>>, vector<8x128xf32>
      %cst = arith.constant dense<0.000000e+00> : vector<8xf32>
      %28 = vector.multi_reduction <add>, %27, %cst [1] : vector<8x128xf32> to vector<8xf32>
      %29 = vector.shape_cast %28 : vector<8xf32> to vector<8x1xf32>
      %c0_25 = arith.constant 0 : index
      %c0_26 = arith.constant 0 : index
      %30 = vector.load %arg4[%c0_25, %c0_26] : memref<8x1xf32, #tpu.memory_space<vmem>>, vector<8x1xf32>
      tpu.vector_store %arg4[%c0_25, %c0_26], %29 {strides = array<i32>} : memref<8x1xf32, #tpu.memory_space<vmem>>, vector<8x1xf32>,
      %c0_27 = arith.constant 0 : index
      %c0_28 = arith.constant 0 : index
      %31 = vector.load %arg7[%c0_27, %c0_28] : memref<8x128xf32, #tpu.memory_space<vmem>>, vector<8x128xf32>
      %cst_29 = arith.constant dense<0.000000e+00> : vector<8xf32>
      %32 = vector.multi_reduction <add>, %31, %cst_29 [1] : vector<8x128xf32> to vector<8xf32>
      %33 = vector.shape_cast %32 : vector<8xf32> to vector<8x1xf32>
      %c0_30 = arith.constant 0 : index
      %c0_31 = arith.constant 0 : index
      %34 = vector.load %arg5[%c0_30, %c0_31] : memref<8x1xf32, #tpu.memory_space<vmem>>, vector<8x1xf32>
      tpu.vector_store %arg5[%c0_30, %c0_31], %33 {strides = array<i32>} : memref<8x1xf32, #tpu.memory_space<vmem>>, vector<8x1xf32>,
    } else {
    }
    return
  }
  func.func @transform_0(%arg0: i32, %arg1: i32) -> (i32, i32) {
    %c0_i32 = arith.constant 0 : i32
    return %arg0, %arg1 : i32, i32
  }
  func.func @transform_1(%arg0: i32, %arg1: i32) -> (i32, i32) {
    %c0_i32 = arith.constant 0 : i32
    %c0_i32_0 = arith.constant 0 : i32
    return %arg0, %c0_i32 : i32, i32
  }
  func.func @transform_2(%arg0: i32, %arg1: i32) -> (i32, i32) {
    %c0_i32 = arith.constant 0 : i32
    %c0_i32_0 = arith.constant 0 : i32
    return %arg0, %c0_i32 : i32, i32
  }
  func.func @transform_3(%arg0: i32, %arg1: i32) -> (i32, i32) {
    %c0_i32 = arith.constant 0 : i32
    %c0_i32_0 = arith.constant 0 : i32
    return %arg0, %c0_i32 : i32, i32
  }
}

</mosaic_0001>

<bundles_post_ra>
// kernel: tpu_custom_call.1
= control target key start
LH: loop header
LB: loop body
LE: loop exit
PB: predicated region body
PF: predicated region fallthrough
CT: control target
= control target key end

     0   :  { %9 = vsyncpa [#allocation5], 0  ;;  %s103_s12 = smov [#allocation4]   ;;  %s146_s0 = inlined_call_operand.hbm [shape: f32[8,256], index: 0, kind: input, shape index: {}]   ;;  %s147_s1 = inlined_call_operand.vmem [shape: f32[8,1], index: 1, kind: input, shape index: {}]   ;;  %s148_s2 = inlined_call_operand.vmem [shape: f32[8,1], index: 2, kind: output, shape index: {0}]   ;;  %s149_s3 = inlined_call_operand.vmem [shape: f32[8,1], index: 3, kind: output, shape index: {1}]  }
   0x1   :  { %s16_s13 = sshll.u32 %s103_s12, 4  ;;  %s79_s16 = scalar_lea.hbm %s146_s0, 256  ;;  %s17_s13 = int_to_ptr.vmem [resolvable:$true] %s16_s13 }
   0x2   :  { %p80_p0 = scmp.ne.s32.totalorder %s146_s0, %s79_s16  ;;  %p83_p1 = scmp.lt.u32.totalorder %s79_s16, %s146_s0 }
   0x4   :  { %p85_p2 = pnand %p83_p1, %p80_p0 }
   0x6   :  { %88 = shalt.err (!%p85_p2)
}
   0x7   :  { %s89_s21 = scalar_lea.vmem %s17_s13, 256  ;;  %p94_p4 = scmp.lt.s32.totalorder %s17_s13, %s17_s13 }
   0x8   :  { %p90_p3 = scmp.ne.s32.totalorder %s17_s13, %s89_s21  ;;  %p95_p5 = scmp.lt.s32.totalorder %s89_s21, %s89_s21 }
   0xa   :  { %p96_p6 = por %p95_p5, %p94_p4 }
   0xc   :  { %p97_p7 = pnand %p96_p6, %p90_p3 }
   0xe   :  { %100 = shalt.err (!%p97_p7)
}
   0xf   :  { %19 = dma.hbm_to_vmem [thread:$0]  %s146_s0, 256, %s17_s13, [#allocation5]  }
  0x10   :  { %101 = dma.done.wait [#allocation5], 256  }
  0x11   :  { %102 = vsyncadd [#allocation5], 4294967040  ;;  %v104_v0 = vmov 0   ;;  %v31_v1 = vld [vmem:[%s147_s1] sm:$0xff]  ;;  %v46_v3 = vld [vmem:[#allocation4 + $0x8] sm:$0xff]  ;;  %vm61_vm0 = vcmask 7168  }
  0x12   :  { %78 = vset.pattern.permute.xlu0 %v104_v0  ;;  %v32_v2 = vld [vmem:[#allocation4] sm:$0xff] }
  0x13   :  { %35 = vperm.xlu0 %78, %v31_v1  }
  0x92   :  { %v36_v4 = vpop.permute.xlu0 %35 }
  0x93   :  { %v38_v5 = vsub.f32 %v32_v2, %v36_v4  ;;  %v47_v6 = vsub.f32 %v46_v3, %v36_v4 }
  0x95   :  { %v49_v7 = vadd.f32 %v47_v6, %v38_v5  ;;  %v43_v8 = vmul.f32 %v38_v5, %v38_v5  ;;  %v52_v9 = vmul.f32 %v47_v6, %v47_v6 }
  0x97   :  { %59 = vadd.xlane.f32.xlu0 %v49_v7  ;;  %v53_v10 = vadd.f32 %v52_v9, %v43_v8 }
  0x99   :  { %64 = vadd.xlane.f32.xlu1 %v53_v10 }
 0x124   :  { %v60_v11 = vpop.xlane.xlu0 %59 }
 0x125   :  { %62 = vst.msk [vmem:[%s148_s2] sm:$0xff] %vm61_vm0, %v60_v11 }
 0x126   :  { %v65_v12 = vpop.xlane.xlu1 %64 }
 0x127   :  { %66 = vst.msk [vmem:[%s149_s3] sm:$0xff] %vm61_vm0, %v65_v12 }
 0x128   :  { %75 = vsyncpa [#allocation5], 1 }

</bundles_post_ra>
